<compile_context>
chip_gen: v5e
topology: v5e:2x2
jax: 0.10.0
libtpu: 0.0.40
codegen_flags: <defaults>
</compile_context>

<pallas_src>
import jax
import jax.numpy as jnp
from jax.experimental import pallas as pl
from jax.experimental.pallas import tpu as pltpu


def _round_up(n, m):
    return pl.cdiv(n, m) * m


def traffic_fused_kernel(x_ref,
                         w1_ref, b1_ref,            # shared: Linear(F, 64)
                         w2_ref, b2_ref,            # shared: Linear(64, 32)
                         wh1_ref, bh1_ref,          # fused head layer 1: [32, 32]
                         wh2_ref, bh2_ref,          # fused head layer 2: [32, out_w]
                         out_ref):
    # ---- shared trunk: Linear -> ReLU -> Linear -> ReLU --------------------
    x = x_ref[...].astype(w1_ref.dtype)                              # f32 -> bf16 in-kernel
    h1 = jnp.dot(x, w1_ref[...], preferred_element_type=jnp.float32) + b1_ref[...]
    h1 = jnp.maximum(h1, 0.0)                                        # [TB, 64] f32
    h2 = jnp.dot(h1.astype(w2_ref.dtype), w2_ref[...],
                 preferred_element_type=jnp.float32) + b2_ref[...]
    h2 = jnp.maximum(h2, 0.0)                                        # [TB, 32] f32

    # ---- fused heads: one dot for both first layers -------------------------
    g = jnp.dot(h2.astype(wh1_ref.dtype), wh1_ref[...],
                preferred_element_type=jnp.float32) + bh1_ref[...]
    g = jnp.maximum(g, 0.0)                                          # [TB, 32] f32

    # ---- fused final layer: block-diagonal weight, narrow (16-lane) output --
    logits = jnp.dot(g.astype(wh2_ref.dtype), wh2_ref[...],
                     preferred_element_type=jnp.float32) + bh2_ref[...]
    out_ref[...] = logits.astype(out_ref.dtype)                      # [TB, out_w] f32


def _choose_tb(B, tb_default):
    """Pick a batch tile: multiple of 8, <= padded batch, >=2 grid steps when
    the batch is large enough (v7x megacore), capped at tb_default."""
    b8 = int(_round_up(B, 8))
    tb = int(min(tb_default, b8))
    if b8 >= 1024:                       # big enough to split across 2 TCs
        half = int(_round_up((b8 + 1) // 2, 8))
        tb = min(tb, half)
    tb = max(8, int(_round_up(tb, 8)))
    return tb


def traffic_model_forward(x, params, *, tb=2048):
    """x: [B, F] f32.  params: dict of weights [in, out] and biases [1, out]."""
    B, F = x.shape
    nm = params["wm2"].shape[1]          # num_mode_classes
    nq = params["wp2"].shape[1]          # num_purpose_classes
    n_out = nm + nq
    out_w = int(_round_up(n_out, 8))     # narrow padded output width (16 for 9)

    compute_dtype = jnp.bfloat16

    # ---- fuse / pack weights (host side, once) ------------------------------
    hm = params["wm1"].shape[1]          # 16
    hp = params["wp1"].shape[1]          # 16
    w1 = params["w1"].astype(compute_dtype)
    w2 = params["w2"].astype(compute_dtype)
    b1 = params["b1"].astype(jnp.float32)
    b2 = params["b2"].astype(jnp.float32)

    wh1 = jnp.concatenate([params["wm1"], params["wp1"]], axis=1).astype(compute_dtype)  # [32, 32]
    bh1 = jnp.concatenate([params["bm1"], params["bp1"]], axis=1).astype(jnp.float32)    # [1, 32]

    wh2 = jnp.zeros((hm + hp, out_w), jnp.float32)
    wh2 = wh2.at[:hm, :nm].set(params["wm2"])
    wh2 = wh2.at[hm:, nm:n_out].set(params["wp2"])
    wh2 = wh2.astype(compute_dtype)                                                      # [32, out_w]
    bh2 = jnp.zeros((1, out_w), jnp.float32)
    bh2 = bh2.at[:, :nm].set(params["bm2"])
    bh2 = bh2.at[:, nm:n_out].set(params["bp2"])                                         # [1, out_w]

    # ---- batch tiling --------------------------------------------------------
    tb = _choose_tb(B, tb)
    b_pad = int(_round_up(B, tb))
    x_p = x                                   # f32, cast to bf16 inside the kernel
    if b_pad != B:
        x_p = jnp.pad(x_p, ((0, b_pad - B), (0, 0)))
    grid = (b_pad // tb,)

    def batch_spec(cols):
        return pl.BlockSpec((tb, cols), lambda i: (i, 0))

    def resident_spec(arr):
        return pl.BlockSpec(arr.shape, lambda i: (0, 0))   # weights stay VMEM-resident

    operands = (x_p, w1, b1, w2, b2, wh1, bh1, wh2, bh2)
    in_specs = [batch_spec(F)] + [resident_spec(a) for a in operands[1:]]

    # Advisory cost estimate (memory-bound kernel; helps XLA schedule around it).
    flops = 2 * b_pad * (F * 64 + 64 * 32 + 32 * 32 + 32 * out_w)
    weight_bytes = sum(int(a.size) * a.dtype.itemsize for a in operands[1:])
    bytes_accessed = int(x_p.size) * 4 + weight_bytes + b_pad * out_w * 4
    cost = pl.CostEstimate(flops=flops, transcendentals=0, bytes_accessed=bytes_accessed)

    out = pl.pallas_call(
        traffic_fused_kernel,
        out_shape=jax.ShapeDtypeStruct((b_pad, out_w), jnp.float32),
        grid=grid,
        in_specs=in_specs,
        out_specs=batch_spec(out_w),
        compiler_params=pltpu.CompilerParams(
            dimension_semantics=("parallel",),   # v7x: shard batch across both TCs
        ),
        cost_estimate=cost,
    )(*operands)

    mode_out = out[:B, :nm]
    purpose_out = out[:B, nm:n_out]
    return mode_out, purpose_out


def init_params(key, input_size, num_mode_classes, num_purpose_classes):
    """Deterministic synthetic init (uniform, Kaiming-ish scale), f32 master copy."""
    def linear(key, fan_in, fan_out):
        kw, kb = jax.random.split(key)
        bound = 1.0 / jnp.sqrt(jnp.float32(fan_in))
        w = jax.random.uniform(kw, (fan_in, fan_out), jnp.float32, -bound, bound)
        b = jax.random.uniform(kb, (1, fan_out), jnp.float32, -bound, bound)
        return w, b

    keys = jax.random.split(key, 6)
    w1, b1 = linear(keys[0], input_size, 64)
    w2, b2 = linear(keys[1], 64, 32)
    wm1, bm1 = linear(keys[2], 32, 16)
    wm2, bm2 = linear(keys[3], 16, num_mode_classes)
    wp1, bp1 = linear(keys[4], 32, 16)
    wp2, bp2 = linear(keys[5], 16, num_purpose_classes)
    return dict(w1=w1, b1=b1, w2=w2, b2=b2,
                wm1=wm1, bm1=bm1, wm2=wm2, bm2=bm2,
                wp1=wp1, bp1=bp1, wp2=wp2, bp2=bp2)


def reference_forward(x, p):
    """f32 reference that mirrors the kernel's bf16 operand rounding."""
    def q(a):
        return a.astype(jnp.bfloat16).astype(jnp.float32)
    h = jnp.maximum(q(x) @ q(p["w1"]) + p["b1"], 0.0)
    h = jnp.maximum(q(h) @ q(p["w2"]) + p["b2"], 0.0)
    m1 = q(jnp.maximum(q(h) @ q(p["wm1"]) + p["bm1"], 0.0))
    p1 = q(jnp.maximum(q(h) @ q(p["wp1"]) + p["bp1"], 0.0))
    m = m1 @ q(p["wm2"]) + p["bm2"]
    q_ = p1 @ q(p["wp2"]) + p["bp2"]
    return m, q_


if __name__ == "__main__":
    key = jax.random.PRNGKey(0)
    k_x, k_p = jax.random.split(key)

    batch = 8
    input_size = 16
    num_mode_classes = 3
    num_purpose_classes = 6

    x = jax.random.normal(k_x, (batch, input_size), jnp.float32)
    params = init_params(k_p, input_size, num_mode_classes, num_purpose_classes)

    mode_out, purpose_out = traffic_model_forward(x, params)
    jax.block_until_ready((mode_out, purpose_out))

    ref_mode, ref_purpose = reference_forward(x, params)
    assert mode_out.shape == (batch, num_mode_classes)
    assert purpose_out.shape == (batch, num_purpose_classes)
    assert jnp.allclose(mode_out, ref_mode, atol=1e-3, rtol=1e-3), \
        float(jnp.max(jnp.abs(mode_out - ref_mode)))
    assert jnp.allclose(purpose_out, ref_purpose, atol=1e-3, rtol=1e-3), \
        float(jnp.max(jnp.abs(purpose_out - ref_purpose)))

    print("KERNEL_OK")
</pallas_src>

<mosaic_0001>
module attributes {stable_mosaic.version = 11 : i64} {
  func.func @traffic_fused_kernel(%arg0: i32, %arg1: memref<8x16xf32, #tpu.memory_space<vmem>>, %arg2: memref<16x64xbf16, #tpu.memory_space<vmem>>, %arg3: memref<1x64xf32, #tpu.memory_space<vmem>>, %arg4: memref<64x32xbf16, #tpu.memory_space<vmem>>, %arg5: memref<1x32xf32, #tpu.memory_space<vmem>>, %arg6: memref<32x32xbf16, #tpu.memory_space<vmem>>, %arg7: memref<1x32xf32, #tpu.memory_space<vmem>>, %arg8: memref<32x16xbf16, #tpu.memory_space<vmem>>, %arg9: memref<1x16xf32, #tpu.memory_space<vmem>>, %arg10: memref<8x16xf32, #tpu.memory_space<vmem>>) attributes {dimension_semantics = [#tpu.dimension_semantics<parallel>], iteration_bounds = array<i64: 1>, scalar_prefetch = 0 : i64, scratch_operands = 0 : i64, tpu.core_type = #tpu.core_type<tc>, window_params = [{transform_indices = @transform_0, window_bounds = array<i64: 8, 16>}, {pipeline_mode = #tpu.pipeline_mode<synchronous>, transform_indices = @transform_1, window_bounds = array<i64: 16, 64>}, {pipeline_mode = #tpu.pipeline_mode<synchronous>, transform_indices = @transform_2, window_bounds = array<i64: 1, 64>}, {pipeline_mode = #tpu.pipeline_mode<synchronous>, transform_indices = @transform_3, window_bounds = array<i64: 64, 32>}, {pipeline_mode = #tpu.pipeline_mode<synchronous>, transform_indices = @transform_4, window_bounds = array<i64: 1, 32>}, {pipeline_mode = #tpu.pipeline_mode<synchronous>, transform_indices = @transform_5, window_bounds = array<i64: 32, 32>}, {pipeline_mode = #tpu.pipeline_mode<synchronous>, transform_indices = @transform_6, window_bounds = array<i64: 1, 32>}, {pipeline_mode = #tpu.pipeline_mode<synchronous>, transform_indices = @transform_7, window_bounds = array<i64: 32, 16>}, {pipeline_mode = #tpu.pipeline_mode<synchronous>, transform_indices = @transform_8, window_bounds = array<i64: 1, 16>}, {transform_indices = @transform_9, window_bounds = array<i64: 8, 16>}]} {
    %c0 = arith.constant 0 : index
    %c0_0 = arith.constant 0 : index
    %0 = vector.load %arg1[%c0, %c0_0] : memref<8x16xf32, #tpu.memory_space<vmem>>, vector<8x16xf32>
    %1 = arith.truncf %0 : vector<8x16xf32> to vector<8x16xbf16>
    %c0_1 = arith.constant 0 : index
    %c0_2 = arith.constant 0 : index
    %2 = vector.load %arg2[%c0_1, %c0_2] : memref<16x64xbf16, #tpu.memory_space<vmem>>, vector<16x64xbf16>
    %cst = arith.constant dense<0.000000e+00> : vector<8x64xf32>
    %3 = tpu.matmul %1, %2, %cst {dimension_numbers = #tpu.dot_dimension_numbers<[1], [0], [0], [1], [0, 0, 1, 1], [], []>} : vector<8x16xbf16>, vector<16x64xbf16>, vector<8x64xf32> -> vector<8x64xf32>
    %c0_3 = arith.constant 0 : index
    %c0_4 = arith.constant 0 : index
    %4 = vector.load %arg3[%c0_3, %c0_4] : memref<1x64xf32, #tpu.memory_space<vmem>>, vector<1x64xf32>
    %5 = vector.broadcast %4 : vector<1x64xf32> to vector<8x64xf32>
    %6 = arith.addf %3, %5 : vector<8x64xf32>
    %cst_5 = arith.constant 0.000000e+00 : f32
    %7 = vector.broadcast %cst_5 : f32 to vector<8x64xf32>
    %8 = arith.maximumf %6, %7 : vector<8x64xf32>
    %9 = arith.truncf %8 : vector<8x64xf32> to vector<8x64xbf16>
    %c0_6 = arith.constant 0 : index
    %c0_7 = arith.constant 0 : index
    %10 = vector.load %arg4[%c0_6, %c0_7] : memref<64x32xbf16, #tpu.memory_space<vmem>>, vector<64x32xbf16>
    %cst_8 = arith.constant dense<0.000000e+00> : vector<8x32xf32>
    %11 = tpu.matmul %9, %10, %cst_8 {dimension_numbers = #tpu.dot_dimension_numbers<[1], [0], [0], [1], [0, 0, 1, 1], [], []>} : vector<8x64xbf16>, vector<64x32xbf16>, vector<8x32xf32> -> vector<8x32xf32>
    %c0_9 = arith.constant 0 : index
    %c0_10 = arith.constant 0 : index
    %12 = vector.load %arg5[%c0_9, %c0_10] : memref<1x32xf32, #tpu.memory_space<vmem>>, vector<1x32xf32>
    %13 = vector.broadcast %12 : vector<1x32xf32> to vector<8x32xf32>
    %14 = arith.addf %11, %13 : vector<8x32xf32>
    %cst_11 = arith.constant 0.000000e+00 : f32
    %15 = vector.broadcast %cst_11 : f32 to vector<8x32xf32>
    %16 = arith.maximumf %14, %15 : vector<8x32xf32>
    %17 = arith.truncf %16 : vector<8x32xf32> to vector<8x32xbf16>
    %c0_12 = arith.constant 0 : index
    %c0_13 = arith.constant 0 : index
    %18 = vector.load %arg6[%c0_12, %c0_13] : memref<32x32xbf16, #tpu.memory_space<vmem>>, vector<32x32xbf16>
    %cst_14 = arith.constant dense<0.000000e+00> : vector<8x32xf32>
    %19 = tpu.matmul %17, %18, %cst_14 {dimension_numbers = #tpu.dot_dimension_numbers<[1], [0], [0], [1], [0, 0, 1, 1], [], []>} : vector<8x32xbf16>, vector<32x32xbf16>, vector<8x32xf32> -> vector<8x32xf32>
    %c0_15 = arith.constant 0 : index
    %c0_16 = arith.constant 0 : index
    %20 = vector.load %arg7[%c0_15, %c0_16] : memref<1x32xf32, #tpu.memory_space<vmem>>, vector<1x32xf32>
    %21 = vector.broadcast %20 : vector<1x32xf32> to vector<8x32xf32>
    %22 = arith.addf %19, %21 : vector<8x32xf32>
    %cst_17 = arith.constant 0.000000e+00 : f32
    %23 = vector.broadcast %cst_17 : f32 to vector<8x32xf32>
    %24 = arith.maximumf %22, %23 : vector<8x32xf32>
    %25 = arith.truncf %24 : vector<8x32xf32> to vector<8x32xbf16>
    %c0_18 = arith.constant 0 : index
    %c0_19 = arith.constant 0 : index
    %26 = vector.load %arg8[%c0_18, %c0_19] : memref<32x16xbf16, #tpu.memory_space<vmem>>, vector<32x16xbf16>
    %cst_20 = arith.constant dense<0.000000e+00> : vector<8x16xf32>
    %27 = tpu.matmul %25, %26, %cst_20 {dimension_numbers = #tpu.dot_dimension_numbers<[1], [0], [0], [1], [0, 0, 1, 1], [], []>} : vector<8x32xbf16>, vector<32x16xbf16>, vector<8x16xf32> -> vector<8x16xf32>
    %c0_21 = arith.constant 0 : index
    %c0_22 = arith.constant 0 : index
    %28 = vector.load %arg9[%c0_21, %c0_22] : memref<1x16xf32, #tpu.memory_space<vmem>>, vector<1x16xf32>
    %29 = vector.broadcast %28 : vector<1x16xf32> to vector<8x16xf32>
    %30 = arith.addf %27, %29 : vector<8x16xf32>
    %c0_23 = arith.constant 0 : index
    %c0_24 = arith.constant 0 : index
    %31 = vector.load %arg10[%c0_23, %c0_24] : memref<8x16xf32, #tpu.memory_space<vmem>>, vector<8x16xf32>
    tpu.vector_store %arg10[%c0_23, %c0_24], %30 {strides = array<i32>} : memref<8x16xf32, #tpu.memory_space<vmem>>, vector<8x16xf32>,
    return
  }
  func.func @transform_0(%arg0: i32) -> (i32, i32) {
    %c0_i32 = arith.constant 0 : i32
    %c0_i32_0 = arith.constant 0 : i32
    return %arg0, %c0_i32 : i32, i32
  }
  func.func @transform_1(%arg0: i32) -> (i32, i32) {
    %c0_i32 = arith.constant 0 : i32
    %c0_i32_0 = arith.constant 0 : i32
    %c0_i32_1 = arith.constant 0 : i32
    return %c0_i32, %c0_i32_0 : i32, i32
  }
  func.func @transform_2(%arg0: i32) -> (i32, i32) {
    %c0_i32 = arith.constant 0 : i32
    %c0_i32_0 = arith.constant 0 : i32
    %c0_i32_1 = arith.constant 0 : i32
    return %c0_i32, %c0_i32_0 : i32, i32
  }
  func.func @transform_3(%arg0: i32) -> (i32, i32) {
    %c0_i32 = arith.constant 0 : i32
    %c0_i32_0 = arith.constant 0 : i32
    %c0_i32_1 = arith.constant 0 : i32
    return %c0_i32, %c0_i32_0 : i32, i32
  }
  func.func @transform_4(%arg0: i32) -> (i32, i32) {
    %c0_i32 = arith.constant 0 : i32
    %c0_i32_0 = arith.constant 0 : i32
    %c0_i32_1 = arith.constant 0 : i32
    return %c0_i32, %c0_i32_0 : i32, i32
  }
  func.func @transform_5(%arg0: i32) -> (i32, i32) {
    %c0_i32 = arith.constant 0 : i32
    %c0_i32_0 = arith.constant 0 : i32
    %c0_i32_1 = arith.constant 0 : i32
    return %c0_i32, %c0_i32_0 : i32, i32
  }
  func.func @transform_6(%arg0: i32) -> (i32, i32) {
    %c0_i32 = arith.constant 0 : i32
    %c0_i32_0 = arith.constant 0 : i32
    %c0_i32_1 = arith.constant 0 : i32
    return %c0_i32, %c0_i32_0 : i32, i32
  }
  func.func @transform_7(%arg0: i32) -> (i32, i32) {
    %c0_i32 = arith.constant 0 : i32
    %c0_i32_0 = arith.constant 0 : i32
    %c0_i32_1 = arith.constant 0 : i32
    return %c0_i32, %c0_i32_0 : i32, i32
  }
  func.func @transform_8(%arg0: i32) -> (i32, i32) {
    %c0_i32 = arith.constant 0 : i32
    %c0_i32_0 = arith.constant 0 : i32
    %c0_i32_1 = arith.constant 0 : i32
    return %c0_i32, %c0_i32_0 : i32, i32
  }
  func.func @transform_9(%arg0: i32) -> (i32, i32) {
    %c0_i32 = arith.constant 0 : i32
    %c0_i32_0 = arith.constant 0 : i32
    return %arg0, %c0_i32 : i32, i32
  }
}

</mosaic_0001>

<bundles_post_ra>
// kernel: tpu_custom_call.1
= control target key start
LH: loop header
LB: loop body
LE: loop exit
PB: predicated region body
PF: predicated region fallthrough
CT: control target
= control target key end

     0   :  { %vm48_vm0 = vcmask 130048   ;;  %s392_s0 = inlined_call_operand.vmem [shape: f32[8,16], index: 0, kind: input, shape index: {}]   ;;  %s393_s1 = inlined_call_operand.vmem [shape: bf16[16,64], index: 1, kind: input, shape index: {}]   ;;  %s394_s2 = inlined_call_operand.vmem [shape: f32[1,64], index: 2, kind: input, shape index: {}]   ;;  %s395_s3 = inlined_call_operand.vmem [shape: bf16[64,32], index: 3, kind: input, shape index: {}]   ;;  %s396_s4 = inlined_call_operand.vmem [shape: f32[1,32], index: 4, kind: input, shape index: {}]   ;;  %s397_s5 = inlined_call_operand.vmem [shape: bf16[32,32], index: 5, kind: input, shape index: {}]   ;;  %s398_s6 = inlined_call_operand.vmem [shape: f32[1,32], index: 6, kind: input, shape index: {}]   ;;  %s399_s7 = inlined_call_operand.vmem [shape: bf16[32,16], index: 7, kind: input, shape index: {}]   ;;  %s400_s8 = inlined_call_operand.vmem [shape: f32[1,16], index: 8, kind: input, shape index: {}]   ;;  %s401_s9 = inlined_call_operand.hbm [shape: f32[8,16], index: 9, kind: output, shape index: {}]  }
   0x1   :  { %v254_v0 = vld [vmem:[%s393_s1] sm:$0xff]  ;;  %v258_v2 = vld [vmem:[%s395_s3 + $0x18] sm:$0xff]  ;;  %v257_v4 = vld [vmem:[%s395_s3 + $0x10] sm:$0xff] }
   0x2   :  { %v34_v1 = vld [vmem:[%s392_s0] sm:$0xff]  ;;  %59 = vmatpush.bf16.msra.mxu0 %v254_v0  ;;  %111 = vmatpush.bf16.msra.mxu1 %v258_v2 }
   0x3   :  { %v35_v3 = vpack.c.bf16 %v34_v1, %v34_v1 }
   0x4   :  { %14 = vsyncpa [#allocation3], 0  ;;  %v256_v5 = vld [vmem:[%s395_s3 + $0x8] sm:$0xff]  ;;  %v255_v6 = vld [vmem:[%s395_s3] sm:$0xff]  ;;  %vm103_vm1 = vcmask 523264   ;;  %vm142_vm2 = vcmask 261120  }
   0x5   :  { %218 = vmatmul.msk.bf16.vlgmr.msra.gmra.mxu0 %vm48_vm0, %v35_v3  ;;  %v264_v7 = vld [vmem:[%s394_s2] ss:$0 sm:$0xff]  ;;  %v260_v13 = vld [vmem:[%s397_s5 + $0x8] sm:$0xff]  ;;  %s294_s10 = smov [#allocation2]  }
   0x6   :  { %112 = vmatpush.bf16.msra.mxu1 %v257_v4  ;;  %152 = vmatpush.bf16.msra.mxu2 %v260_v13  ;;  %v259_v14 = vld [vmem:[%s397_s5] sm:$0xff]  ;;  %v262_v21 = vld [vmem:[%s399_s7 + $0x8] sm:$0xff]  ;;  %s203_s11 = sshll.u32 %s294_s10, 4  ;;  %s204_s11 = int_to_ptr.vmem [resolvable:$true] %s203_s11 }
   0x7   :  { %v265_v15 = vld [vmem:[%s396_s4] ss:$0 sm:$0xff]  ;;  %190 = vmatpush.bf16.msra.mxu3 %v262_v21 }
   0x8   :  { %v261_v22 = vld [vmem:[%s399_s7] sm:$0xff]  ;;  %s205_s7 = sshll.u32 %s401_s9, 4  ;;  %s206_s7 = int_to_ptr.hbm [resolvable:$true] %s205_s7 }
   0x9   :  { %v266_v23 = vld [vmem:[%s398_s6] ss:$0 sm:$0xff] }
   0xa   :  { %113 = vmatpush.bf16.msra.mxu1 %v256_v5  ;;  %153 = vmatpush.bf16.msra.mxu2 %v259_v14  ;;  %v267_v29 = vld [vmem:[%s400_s8] ss:$0 sm:$0xff] }
   0xb   :  { %191 = vmatpush.bf16.msra.mxu3 %v261_v22 }
   0xe   :  { %114 = vmatpush.bf16.msra.mxu1 %v255_v6 }
  0x82   :  { %v61_v8 = vpop.f32.mrf.mxu0 }
  0x83   :  { %v62_v9 = vadd.f32 %v264_v7, %v61_v8 }
  0x85   :  { %v65_v10 = vmax.f32 %v62_v9, 0.0 }
  0x87   :  { %v66_v11 = vpack.c.bf16 %v65_v10, %v65_v10 }
  0x89   :  { %235 = vmatmul.msk.bf16.vlgmr.msra.gmra.mxu1 %vm103_vm1, %v66_v11 }
  0x8a   :  { %v63_v12 = vpop.f32.mrf.mxu0 }
 0x106   :  { %v116_v16 = vpop.f32.mrf.mxu1 }
 0x107   :  { %v117_v17 = vadd.f32 %v265_v15, %v116_v16 }
 0x109   :  { %v120_v18 = vmax.f32 %v117_v17, 0.0 }
 0x10b   :  { %v121_v19 = vpack.c.bf16 %v120_v18, %v120_v18 }
 0x10d   :  { %244 = vmatmul.msk.bf16.vlgmr.msra.gmra.mxu2 %vm142_vm2, %v121_v19 }
 0x10e   :  { %v118_v20 = vpop.f32.mrf.mxu1 }
 0x190   :  { %v155_v24 = vpop.f32.mrf.mxu2 }
 0x191   :  { %v156_v25 = vadd.f32 %v266_v23, %v155_v24 }
 0x193   :  { %v159_v26 = vmax.f32 %v156_v25, 0.0 }
 0x195   :  { %v160_v27 = vpack.c.bf16 %v159_v26, %v159_v26 }
 0x197   :  { %253 = vmatmul.msk.bf16.vlgmr.msra.gmra.mxu3 %vm142_vm2, %v160_v27 }
 0x198   :  { %v157_v28 = vpop.f32.mrf.mxu2 }
 0x21a   :  { %v193_v30 = vpop.f32.mrf.mxu3 }
 0x21b   :  { %v194_v31 = vadd.f32 %v267_v29, %v193_v30 }
 0x21d   :  { %197 = vst.msk [vmem:[#allocation2] sm:$0xff] %vm48_vm0, %v194_v31 }
 0x21e   :  { %208 = dma.vmem_to_hbm [thread:$0]  %s204_s11, 128, %s206_s7, [#allocation3]  }
 0x222   :  { %v195_v32 = vpop.f32.mrf.mxu3 }
 0x223   :  { %292 = dma.done.wait [#allocation3], 128  }
 0x224   :  { %293 = vsyncadd [#allocation3], 4294967168 }
 0x225   :  { %213 = vsyncpa [#allocation3], 1 }

</bundles_post_ra>
